<compile_context>
chip_gen: v7x
topology: tpu7x:2x2x1
jax: 0.10.0
libtpu: 0.0.40
codegen_flags: <defaults>
</compile_context>

<pallas_src>
import functools

import jax
import jax.numpy as jnp
from jax.experimental import pallas as pl
from jax.experimental.pallas import tpu as pltpu


def _mha_kernel(x_ref, wq_ref, bq_ref, wk_ref, bk_ref, wv_ref, bv_ref,
                wp_ref, bp_ref, o_ref, *, n_heads, scale):
    # x_ref : (1, T, D)                 current batch element
    # wq/wk/wv_ref : (n_heads, D, hs)   stacked per-head projection weights
    # bq/bk/bv_ref : (n_heads, 1, hs)
    # wp_ref: (n_heads, hs, D)          output projection, split per head
    # bp_ref: (1, D)
    # o_ref : (1, T, D)
    x = x_ref[0]                       # (T, D)
    T, D = x.shape

    # Accumulate the output projection per head:  concat(heads) @ Wp
    #   == sum_h out_h @ Wp[h]   (avoids lane-axis concatenate in-kernel).
    acc = jnp.zeros((T, D), dtype=jnp.float32)

    for h in range(n_heads):           # n_heads is small & static -> unrolled
        q = jnp.dot(x, wq_ref[h], preferred_element_type=jnp.float32) + bq_ref[h]
        k = jnp.dot(x, wk_ref[h], preferred_element_type=jnp.float32) + bk_ref[h]
        v = jnp.dot(x, wv_ref[h], preferred_element_type=jnp.float32) + bv_ref[h]

        # scores = k @ q^T * d_model**-0.5   (exactly as the PyTorch module)
        s = jax.lax.dot_general(
            k, q, dimension_numbers=(((1,), (1,)), ((), ())),
            preferred_element_type=jnp.float32) * scale          # (T, T)

        # softmax over the last axis
        s = s - jnp.max(s, axis=-1, keepdims=True)
        e = jnp.exp(s)
        a = e / jnp.sum(e, axis=-1, keepdims=True)
        # TODO(synk): attention-dropout mask would be applied to `a` here.

        out_h = jnp.dot(a, v, preferred_element_type=jnp.float32)          # (T, hs)
        acc = acc + jnp.dot(out_h, wp_ref[h],
                            preferred_element_type=jnp.float32)            # (T, D)

    y = acc + bp_ref[...]
    # TODO(synk): output dropout would be applied to `y` here (eval: identity).
    o_ref[0] = y.astype(o_ref.dtype)


def multi_head_attention(x, wq, bq, wk, bk, wv, bv, wp, bp):
    """x: (B, T, d_model). Weights stacked per head:
       wq/wk/wv: (n_heads, d_model, head_size), bq/bk/bv: (n_heads, 1, head_size),
       wp: (n_heads, head_size, d_model), bp: (1, d_model).
       Returns (B, T, d_model)."""
    B, T, D = x.shape
    n_heads, _, hs = wq.shape
    scale = float(D) ** -0.5

    kernel = functools.partial(_mha_kernel, n_heads=n_heads, scale=scale)

    # Advisory cost estimate for XLA scheduling around the custom call.
    flops = (3 * 2 * B * n_heads * T * D * hs          # q/k/v projections
             + 4 * B * n_heads * T * T * hs            # scores + weighted sum
             + 2 * B * T * (n_heads * hs) * D)         # output projection
    itemsize = jnp.dtype(x.dtype).itemsize
    bytes_accessed = int(
        (x.size + 3 * wq.size + 3 * bq.size + wp.size + bp.size + B * T * D)
        * itemsize)
    cost = pl.CostEstimate(flops=int(flops),
                           transcendentals=int(B * n_heads * T * T),
                           bytes_accessed=bytes_accessed)

    const3 = lambda b: (0, 0, 0)   # weights: constant block index -> DMA'd once
    const2 = lambda b: (0, 0)

    out = pl.pallas_call(
        kernel,
        out_shape=jax.ShapeDtypeStruct((B, T, D), x.dtype),
        grid_spec=pltpu.PrefetchScalarGridSpec(
            num_scalar_prefetch=0,
            grid=(B,),
            in_specs=[
                pl.BlockSpec((1, T, D), lambda b: (b, 0, 0)),        # x slab
                pl.BlockSpec((n_heads, D, hs), const3),              # Wq
                pl.BlockSpec((n_heads, 1, hs), const3),              # bq
                pl.BlockSpec((n_heads, D, hs), const3),              # Wk
                pl.BlockSpec((n_heads, 1, hs), const3),              # bk
                pl.BlockSpec((n_heads, D, hs), const3),              # Wv
                pl.BlockSpec((n_heads, 1, hs), const3),              # bv
                pl.BlockSpec((n_heads, hs, D), const3),              # Wp (per head)
                pl.BlockSpec((1, D), const2),                        # bp
            ],
            out_specs=pl.BlockSpec((1, T, D), lambda b: (b, 0, 0)),
        ),
        compiler_params=pltpu.CompilerParams(
            dimension_semantics=("parallel",)),
        cost_estimate=cost,
    )(x, wq, bq, wk, bk, wv, bv, wp, bp)
    return out


def _ref_mha(x, wq, bq, wk, bk, wv, bv, wp, bp):
    """Pure-JAX reference following the PyTorch module exactly."""
    B, T, D = x.shape
    n_heads, _, hs = wq.shape
    scale = float(D) ** -0.5
    outs = []
    for h in range(n_heads):
        q = x @ wq[h] + bq[h]
        k = x @ wk[h] + bk[h]
        v = x @ wv[h] + bv[h]
        s = jnp.einsum('bid,bjd->bij', k, q) * scale     # k @ q^T
        a = jax.nn.softmax(s, axis=-1)
        outs.append(jnp.einsum('bij,bjd->bid', a, v))
    cat = jnp.concatenate(outs, axis=-1)                 # (B, T, n_heads*hs)
    return cat @ wp.reshape(n_heads * hs, D) + bp[0]


if __name__ == "__main__":
    # Small shapes consistent with the module: d_model=32, n_heads=4, head_size=8
    B, T, D = 2, 8, 32
    n_heads, hs = 4, 8

    key = jax.random.PRNGKey(0)
    kx, kq, kbq, kk, kbk, kv, kbv, kp, kbp = jax.random.split(key, 9)

    x = jax.random.normal(kx, (B, T, D), dtype=jnp.float32)
    wq = jax.random.normal(kq, (n_heads, D, hs), dtype=jnp.float32) * (1.0 / D ** 0.5)
    bq = jax.random.normal(kbq, (n_heads, 1, hs), dtype=jnp.float32) * 0.01
    wk = jax.random.normal(kk, (n_heads, D, hs), dtype=jnp.float32) * (1.0 / D ** 0.5)
    bk = jax.random.normal(kbk, (n_heads, 1, hs), dtype=jnp.float32) * 0.01
    wv = jax.random.normal(kv, (n_heads, D, hs), dtype=jnp.float32) * (1.0 / D ** 0.5)
    bv = jax.random.normal(kbv, (n_heads, 1, hs), dtype=jnp.float32) * 0.01
    wp = jax.random.normal(kp, (n_heads, hs, D), dtype=jnp.float32) * (1.0 / (n_heads * hs) ** 0.5)
    bp = jax.random.normal(kbp, (1, D), dtype=jnp.float32) * 0.01

    y = multi_head_attention(x, wq, bq, wk, bk, wv, bv, wp, bp)
    jax.block_until_ready(y)

    y_ref = _ref_mha(x, wq, bq, wk, bk, wv, bv, wp, bp)
    assert y.shape == (B, T, D)
    assert jnp.allclose(y, y_ref, atol=1e-4, rtol=1e-4), "mismatch vs reference"

    print("KERNEL_OK")
</pallas_src>

<mosaic_0001>
module attributes {stable_mosaic.version = 11 : i64} {
  func.func @_mha_kernel(%arg0: i32, %arg1: memref<1x8x32xf32, #tpu.memory_space<vmem>>, %arg2: memref<4x32x8xf32, #tpu.memory_space<vmem>>, %arg3: memref<4x1x8xf32, #tpu.memory_space<vmem>>, %arg4: memref<4x32x8xf32, #tpu.memory_space<vmem>>, %arg5: memref<4x1x8xf32, #tpu.memory_space<vmem>>, %arg6: memref<4x32x8xf32, #tpu.memory_space<vmem>>, %arg7: memref<4x1x8xf32, #tpu.memory_space<vmem>>, %arg8: memref<4x8x32xf32, #tpu.memory_space<vmem>>, %arg9: memref<1x32xf32, #tpu.memory_space<vmem>>, %arg10: memref<1x8x32xf32, #tpu.memory_space<vmem>>) attributes {dimension_semantics = [#tpu.dimension_semantics<parallel>], iteration_bounds = array<i64: 2>, scalar_prefetch = 0 : i64, scratch_operands = 0 : i64, tpu.core_type = #tpu.core_type<tc>, window_params = [{transform_indices = @transform_0, window_bounds = array<i64: 1, 8, 32>}, {pipeline_mode = #tpu.pipeline_mode<synchronous>, transform_indices = @transform_1, window_bounds = array<i64: 4, 32, 8>}, {pipeline_mode = #tpu.pipeline_mode<synchronous>, transform_indices = @transform_2, window_bounds = array<i64: 4, 1, 8>}, {pipeline_mode = #tpu.pipeline_mode<synchronous>, transform_indices = @transform_3, window_bounds = array<i64: 4, 32, 8>}, {pipeline_mode = #tpu.pipeline_mode<synchronous>, transform_indices = @transform_4, window_bounds = array<i64: 4, 1, 8>}, {pipeline_mode = #tpu.pipeline_mode<synchronous>, transform_indices = @transform_5, window_bounds = array<i64: 4, 32, 8>}, {pipeline_mode = #tpu.pipeline_mode<synchronous>, transform_indices = @transform_6, window_bounds = array<i64: 4, 1, 8>}, {pipeline_mode = #tpu.pipeline_mode<synchronous>, transform_indices = @transform_7, window_bounds = array<i64: 4, 8, 32>}, {pipeline_mode = #tpu.pipeline_mode<synchronous>, transform_indices = @transform_8, window_bounds = array<i64: 1, 32>}, {transform_indices = @transform_9, window_bounds = array<i64: 1, 8, 32>}]} {
    %c0 = arith.constant 0 : index
    %c0_0 = arith.constant 0 : index
    %c0_1 = arith.constant 0 : index
    %0 = vector.load %arg1[%c0, %c0_0, %c0_1] : memref<1x8x32xf32, #tpu.memory_space<vmem>>, vector<1x8x32xf32>
    %1 = vector.shape_cast %0 : vector<1x8x32xf32> to vector<8x32xf32>
    %cst = arith.constant 0.000000e+00 : f32
    %2 = vector.broadcast %cst : f32 to vector<8x32xf32>
    %c0_2 = arith.constant 0 : index
    %c0_3 = arith.constant 0 : index
    %c0_4 = arith.constant 0 : index
    %3 = vector.load %arg2[%c0_2, %c0_3, %c0_4] : memref<4x32x8xf32, #tpu.memory_space<vmem>>, vector<1x32x8xf32>
    %4 = vector.shape_cast %3 : vector<1x32x8xf32> to vector<32x8xf32>
    %cst_5 = arith.constant dense<0.000000e+00> : vector<8x8xf32>
    %5 = tpu.matmul %1, %4, %cst_5 {dimension_numbers = #tpu.dot_dimension_numbers<[1], [0], [0], [1], [0, 0, 1, 1], [], []>} : vector<8x32xf32>, vector<32x8xf32>, vector<8x8xf32> -> vector<8x8xf32>
    %c0_6 = arith.constant 0 : index
    %c0_7 = arith.constant 0 : index
    %c0_8 = arith.constant 0 : index
    %6 = vector.load %arg3[%c0_6, %c0_7, %c0_8] : memref<4x1x8xf32, #tpu.memory_space<vmem>>, vector<1x1x8xf32>
    %7 = vector.shape_cast %6 : vector<1x1x8xf32> to vector<1x8xf32>
    %8 = vector.broadcast %7 : vector<1x8xf32> to vector<8x8xf32>
    %9 = arith.addf %5, %8 : vector<8x8xf32>
    %c0_9 = arith.constant 0 : index
    %c0_10 = arith.constant 0 : index
    %c0_11 = arith.constant 0 : index
    %10 = vector.load %arg4[%c0_9, %c0_10, %c0_11] : memref<4x32x8xf32, #tpu.memory_space<vmem>>, vector<1x32x8xf32>
    %11 = vector.shape_cast %10 : vector<1x32x8xf32> to vector<32x8xf32>
    %cst_12 = arith.constant dense<0.000000e+00> : vector<8x8xf32>
    %12 = tpu.matmul %1, %11, %cst_12 {dimension_numbers = #tpu.dot_dimension_numbers<[1], [0], [0], [1], [0, 0, 1, 1], [], []>} : vector<8x32xf32>, vector<32x8xf32>, vector<8x8xf32> -> vector<8x8xf32>
    %c0_13 = arith.constant 0 : index
    %c0_14 = arith.constant 0 : index
    %c0_15 = arith.constant 0 : index
    %13 = vector.load %arg5[%c0_13, %c0_14, %c0_15] : memref<4x1x8xf32, #tpu.memory_space<vmem>>, vector<1x1x8xf32>
    %14 = vector.shape_cast %13 : vector<1x1x8xf32> to vector<1x8xf32>
    %15 = vector.broadcast %14 : vector<1x8xf32> to vector<8x8xf32>
    %16 = arith.addf %12, %15 : vector<8x8xf32>
    %c0_16 = arith.constant 0 : index
    %c0_17 = arith.constant 0 : index
    %c0_18 = arith.constant 0 : index
    %17 = vector.load %arg6[%c0_16, %c0_17, %c0_18] : memref<4x32x8xf32, #tpu.memory_space<vmem>>, vector<1x32x8xf32>
    %18 = vector.shape_cast %17 : vector<1x32x8xf32> to vector<32x8xf32>
    %cst_19 = arith.constant dense<0.000000e+00> : vector<8x8xf32>
    %19 = tpu.matmul %1, %18, %cst_19 {dimension_numbers = #tpu.dot_dimension_numbers<[1], [0], [0], [1], [0, 0, 1, 1], [], []>} : vector<8x32xf32>, vector<32x8xf32>, vector<8x8xf32> -> vector<8x8xf32>
    %c0_20 = arith.constant 0 : index
    %c0_21 = arith.constant 0 : index
    %c0_22 = arith.constant 0 : index
    %20 = vector.load %arg7[%c0_20, %c0_21, %c0_22] : memref<4x1x8xf32, #tpu.memory_space<vmem>>, vector<1x1x8xf32>
    %21 = vector.shape_cast %20 : vector<1x1x8xf32> to vector<1x8xf32>
    %22 = vector.broadcast %21 : vector<1x8xf32> to vector<8x8xf32>
    %23 = arith.addf %19, %22 : vector<8x8xf32>
    %cst_23 = arith.constant dense<0.000000e+00> : vector<8x8xf32>
    %24 = tpu.matmul %16, %9, %cst_23 {dimension_numbers = #tpu.dot_dimension_numbers<[1], [1], [0], [0], [0, 0, 1, 0], [], []>} : vector<8x8xf32>, vector<8x8xf32>, vector<8x8xf32> -> vector<8x8xf32>
    %cst_24 = arith.constant 0.176776692 : f32
    %25 = vector.broadcast %cst_24 : f32 to vector<8x8xf32>
    %26 = arith.mulf %24, %25 : vector<8x8xf32>
    %cst_25 = arith.constant dense<0xFF800000> : vector<8xf32>
    %27 = vector.multi_reduction <maximumf>, %26, %cst_25 [1] : vector<8x8xf32> to vector<8xf32>
    %28 = vector.shape_cast %27 : vector<8xf32> to vector<8x1xf32>
    %29 = vector.broadcast %28 : vector<8x1xf32> to vector<8x8xf32>
    %30 = arith.subf %26, %29 : vector<8x8xf32>
    %31 = math.exp %30 : vector<8x8xf32>
    %cst_26 = arith.constant dense<0.000000e+00> : vector<8xf32>
    %32 = vector.multi_reduction <add>, %31, %cst_26 [1] : vector<8x8xf32> to vector<8xf32>
    %33 = vector.shape_cast %32 : vector<8xf32> to vector<8x1xf32>
    %34 = vector.broadcast %33 : vector<8x1xf32> to vector<8x8xf32>
    %35 = arith.divf %31, %34 : vector<8x8xf32>
    %cst_27 = arith.constant dense<0.000000e+00> : vector<8x8xf32>
    %36 = tpu.matmul %35, %23, %cst_27 {dimension_numbers = #tpu.dot_dimension_numbers<[1], [0], [0], [1], [0, 0, 1, 1], [], []>} : vector<8x8xf32>, vector<8x8xf32>, vector<8x8xf32> -> vector<8x8xf32>
    %c0_28 = arith.constant 0 : index
    %c0_29 = arith.constant 0 : index
    %c0_30 = arith.constant 0 : index
    %37 = vector.load %arg8[%c0_28, %c0_29, %c0_30] : memref<4x8x32xf32, #tpu.memory_space<vmem>>, vector<1x8x32xf32>
    %38 = vector.shape_cast %37 : vector<1x8x32xf32> to vector<8x32xf32>
    %cst_31 = arith.constant dense<0.000000e+00> : vector<8x32xf32>
    %39 = tpu.matmul %36, %38, %cst_31 {dimension_numbers = #tpu.dot_dimension_numbers<[1], [0], [0], [1], [0, 0, 1, 1], [], []>} : vector<8x8xf32>, vector<8x32xf32>, vector<8x32xf32> -> vector<8x32xf32>
    %40 = arith.addf %2, %39 : vector<8x32xf32>
    %c1 = arith.constant 1 : index
    %c0_32 = arith.constant 0 : index
    %c0_33 = arith.constant 0 : index
    %41 = vector.load %arg2[%c1, %c0_32, %c0_33] : memref<4x32x8xf32, #tpu.memory_space<vmem>>, vector<1x32x8xf32>
    %42 = vector.shape_cast %41 : vector<1x32x8xf32> to vector<32x8xf32>
    %cst_34 = arith.constant dense<0.000000e+00> : vector<8x8xf32>
    %43 = tpu.matmul %1, %42, %cst_34 {dimension_numbers = #tpu.dot_dimension_numbers<[1], [0], [0], [1], [0, 0, 1, 1], [], []>} : vector<8x32xf32>, vector<32x8xf32>, vector<8x8xf32> -> vector<8x8xf32>
    %c1_35 = arith.constant 1 : index
    %c0_36 = arith.constant 0 : index
    %c0_37 = arith.constant 0 : index
    %44 = vector.load %arg3[%c1_35, %c0_36, %c0_37] : memref<4x1x8xf32, #tpu.memory_space<vmem>>, vector<1x1x8xf32>
    %45 = vector.shape_cast %44 : vector<1x1x8xf32> to vector<1x8xf32>
    %46 = vector.broadcast %45 : vector<1x8xf32> to vector<8x8xf32>
    %47 = arith.addf %43, %46 : vector<8x8xf32>
    %c1_38 = arith.constant 1 : index
    %c0_39 = arith.constant 0 : index
    %c0_40 = arith.constant 0 : index
    %48 = vector.load %arg4[%c1_38, %c0_39, %c0_40] : memref<4x32x8xf32, #tpu.memory_space<vmem>>, vector<1x32x8xf32>
    %49 = vector.shape_cast %48 : vector<1x32x8xf32> to vector<32x8xf32>
    %cst_41 = arith.constant dense<0.000000e+00> : vector<8x8xf32>
    %50 = tpu.matmul %1, %49, %cst_41 {dimension_numbers = #tpu.dot_dimension_numbers<[1], [0], [0], [1], [0, 0, 1, 1], [], []>} : vector<8x32xf32>, vector<32x8xf32>, vector<8x8xf32> -> vector<8x8xf32>
    %c1_42 = arith.constant 1 : index
    %c0_43 = arith.constant 0 : index
    %c0_44 = arith.constant 0 : index
    %51 = vector.load %arg5[%c1_42, %c0_43, %c0_44] : memref<4x1x8xf32, #tpu.memory_space<vmem>>, vector<1x1x8xf32>
    %52 = vector.shape_cast %51 : vector<1x1x8xf32> to vector<1x8xf32>
    %53 = vector.broadcast %52 : vector<1x8xf32> to vector<8x8xf32>
    %54 = arith.addf %50, %53 : vector<8x8xf32>
    %c1_45 = arith.constant 1 : index
    %c0_46 = arith.constant 0 : index
    %c0_47 = arith.constant 0 : index
    %55 = vector.load %arg6[%c1_45, %c0_46, %c0_47] : memref<4x32x8xf32, #tpu.memory_space<vmem>>, vector<1x32x8xf32>
    %56 = vector.shape_cast %55 : vector<1x32x8xf32> to vector<32x8xf32>
    %cst_48 = arith.constant dense<0.000000e+00> : vector<8x8xf32>
    %57 = tpu.matmul %1, %56, %cst_48 {dimension_numbers = #tpu.dot_dimension_numbers<[1], [0], [0], [1], [0, 0, 1, 1], [], []>} : vector<8x32xf32>, vector<32x8xf32>, vector<8x8xf32> -> vector<8x8xf32>
    %c1_49 = arith.constant 1 : index
    %c0_50 = arith.constant 0 : index
    %c0_51 = arith.constant 0 : index
    %58 = vector.load %arg7[%c1_49, %c0_50, %c0_51] : memref<4x1x8xf32, #tpu.memory_space<vmem>>, vector<1x1x8xf32>
    %59 = vector.shape_cast %58 : vector<1x1x8xf32> to vector<1x8xf32>
    %60 = vector.broadcast %59 : vector<1x8xf32> to vector<8x8xf32>
    %61 = arith.addf %57, %60 : vector<8x8xf32>
    %cst_52 = arith.constant dense<0.000000e+00> : vector<8x8xf32>
    %62 = tpu.matmul %54, %47, %cst_52 {dimension_numbers = #tpu.dot_dimension_numbers<[1], [1], [0], [0], [0, 0, 1, 0], [], []>} : vector<8x8xf32>, vector<8x8xf32>, vector<8x8xf32> -> vector<8x8xf32>
    %cst_53 = arith.constant 0.176776692 : f32
    %63 = vector.broadcast %cst_53 : f32 to vector<8x8xf32>
    %64 = arith.mulf %62, %63 : vector<8x8xf32>
    %cst_54 = arith.constant dense<0xFF800000> : vector<8xf32>
    %65 = vector.multi_reduction <maximumf>, %64, %cst_54 [1] : vector<8x8xf32> to vector<8xf32>
    %66 = vector.shape_cast %65 : vector<8xf32> to vector<8x1xf32>
    %67 = vector.broadcast %66 : vector<8x1xf32> to vector<8x8xf32>
    %68 = arith.subf %64, %67 : vector<8x8xf32>
    %69 = math.exp %68 : vector<8x8xf32>
    %cst_55 = arith.constant dense<0.000000e+00> : vector<8xf32>
    %70 = vector.multi_reduction <add>, %69, %cst_55 [1] : vector<8x8xf32> to vector<8xf32>
    %71 = vector.shape_cast %70 : vector<8xf32> to vector<8x1xf32>
    %72 = vector.broadcast %71 : vector<8x1xf32> to vector<8x8xf32>
    %73 = arith.divf %69, %72 : vector<8x8xf32>
    %cst_56 = arith.constant dense<0.000000e+00> : vector<8x8xf32>
    %74 = tpu.matmul %73, %61, %cst_56 {dimension_numbers = #tpu.dot_dimension_numbers<[1], [0], [0], [1], [0, 0, 1, 1], [], []>} : vector<8x8xf32>, vector<8x8xf32>, vector<8x8xf32> -> vector<8x8xf32>
    %c1_57 = arith.constant 1 : index
    %c0_58 = arith.constant 0 : index
    %c0_59 = arith.constant 0 : index
    %75 = vector.load %arg8[%c1_57, %c0_58, %c0_59] : memref<4x8x32xf32, #tpu.memory_space<vmem>>, vector<1x8x32xf32>
    %76 = vector.shape_cast %75 : vector<1x8x32xf32> to vector<8x32xf32>
    %cst_60 = arith.constant dense<0.000000e+00> : vector<8x32xf32>
    %77 = tpu.matmul %74, %76, %cst_60 {dimension_numbers = #tpu.dot_dimension_numbers<[1], [0], [0], [1], [0, 0, 1, 1], [], []>} : vector<8x8xf32>, vector<8x32xf32>, vector<8x32xf32> -> vector<8x32xf32>
    %78 = arith.addf %40, %77 : vector<8x32xf32>
    %c2 = arith.constant 2 : index
    %c0_61 = arith.constant 0 : index
    %c0_62 = arith.constant 0 : index
    %79 = vector.load %arg2[%c2, %c0_61, %c0_62] : memref<4x32x8xf32, #tpu.memory_space<vmem>>, vector<1x32x8xf32>
    %80 = vector.shape_cast %79 : vector<1x32x8xf32> to vector<32x8xf32>
    %cst_63 = arith.constant dense<0.000000e+00> : vector<8x8xf32>
    %81 = tpu.matmul %1, %80, %cst_63 {dimension_numbers = #tpu.dot_dimension_numbers<[1], [0], [0], [1], [0, 0, 1, 1], [], []>} : vector<8x32xf32>, vector<32x8xf32>, vector<8x8xf32> -> vector<8x8xf32>
    %c2_64 = arith.constant 2 : index
    %c0_65 = arith.constant 0 : index
    %c0_66 = arith.constant 0 : index
    %82 = vector.load %arg3[%c2_64, %c0_65, %c0_66] : memref<4x1x8xf32, #tpu.memory_space<vmem>>, vector<1x1x8xf32>
    %83 = vector.shape_cast %82 : vector<1x1x8xf32> to vector<1x8xf32>
    %84 = vector.broadcast %83 : vector<1x8xf32> to vector<8x8xf32>
    %85 = arith.addf %81, %84 : vector<8x8xf32>
    %c2_67 = arith.constant 2 : index
    %c0_68 = arith.constant 0 : index
    %c0_69 = arith.constant 0 : index
    %86 = vector.load %arg4[%c2_67, %c0_68, %c0_69] : memref<4x32x8xf32, #tpu.memory_space<vmem>>, vector<1x32x8xf32>
    %87 = vector.shape_cast %86 : vector<1x32x8xf32> to vector<32x8xf32>
    %cst_70 = arith.constant dense<0.000000e+00> : vector<8x8xf32>
    %88 = tpu.matmul %1, %87, %cst_70 {dimension_numbers = #tpu.dot_dimension_numbers<[1], [0], [0], [1], [0, 0, 1, 1], [], []>} : vector<8x32xf32>, vector<32x8xf32>, vector<8x8xf32> -> vector<8x8xf32>
    %c2_71 = arith.constant 2 : index
    %c0_72 = arith.constant 0 : index
    %c0_73 = arith.constant 0 : index
    %89 = vector.load %arg5[%c2_71, %c0_72, %c0_73] : memref<4x1x8xf32, #tpu.memory_space<vmem>>, vector<1x1x8xf32>
    %90 = vector.shape_cast %89 : vector<1x1x8xf32> to vector<1x8xf32>
    %91 = vector.broadcast %90 : vector<1x8xf32> to vector<8x8xf32>
    %92 = arith.addf %88, %91 : vector<8x8xf32>
    %c2_74 = arith.constant 2 : index
    %c0_75 = arith.constant 0 : index
    %c0_76 = arith.constant 0 : index
    %93 = vector.load %arg6[%c2_74, %c0_75, %c0_76] : memref<4x32x8xf32, #tpu.memory_space<vmem>>, vector<1x32x8xf32>
    %94 = vector.shape_cast %93 : vector<1x32x8xf32> to vector<32x8xf32>
    %cst_77 = arith.constant dense<0.000000e+00> : vector<8x8xf32>
    %95 = tpu.matmul %1, %94, %cst_77 {dimension_numbers = #tpu.dot_dimension_numbers<[1], [0], [0], [1], [0, 0, 1, 1], [], []>} : vector<8x32xf32>, vector<32x8xf32>, vector<8x8xf32> -> vector<8x8xf32>
    %c2_78 = arith.constant 2 : index
    %c0_79 = arith.constant 0 : index
    %c0_80 = arith.constant 0 : index
    %96 = vector.load %arg7[%c2_78, %c0_79, %c0_80] : memref<4x1x8xf32, #tpu.memory_space<vmem>>, vector<1x1x8xf32>
    %97 = vector.shape_cast %96 : vector<1x1x8xf32> to vector<1x8xf32>
    %98 = vector.broadcast %97 : vector<1x8xf32> to vector<8x8xf32>
    %99 = arith.addf %95, %98 : vector<8x8xf32>
    %cst_81 = arith.constant dense<0.000000e+00> : vector<8x8xf32>
    %100 = tpu.matmul %92, %85, %cst_81 {dimension_numbers = #tpu.dot_dimension_numbers<[1], [1], [0], [0], [0, 0, 1, 0], [], []>} : vector<8x8xf32>, vector<8x8xf32>, vector<8x8xf32> -> vector<8x8xf32>
    %cst_82 = arith.constant 0.176776692 : f32
    %101 = vector.broadcast %cst_82 : f32 to vector<8x8xf32>
    %102 = arith.mulf %100, %101 : vector<8x8xf32>
    %cst_83 = arith.constant dense<0xFF800000> : vector<8xf32>
    %103 = vector.multi_reduction <maximumf>, %102, %cst_83 [1] : vector<8x8xf32> to vector<8xf32>
    %104 = vector.shape_cast %103 : vector<8xf32> to vector<8x1xf32>
    %105 = vector.broadcast %104 : vector<8x1xf32> to vector<8x8xf32>
    %106 = arith.subf %102, %105 : vector<8x8xf32>
    %107 = math.exp %106 : vector<8x8xf32>
    %cst_84 = arith.constant dense<0.000000e+00> : vector<8xf32>
    %108 = vector.multi_reduction <add>, %107, %cst_84 [1] : vector<8x8xf32> to vector<8xf32>
    %109 = vector.shape_cast %108 : vector<8xf32> to vector<8x1xf32>
    %110 = vector.broadcast %109 : vector<8x1xf32> to vector<8x8xf32>
    %111 = arith.divf %107, %110 : vector<8x8xf32>
    %cst_85 = arith.constant dense<0.000000e+00> : vector<8x8xf32>
    %112 = tpu.matmul %111, %99, %cst_85 {dimension_numbers = #tpu.dot_dimension_numbers<[1], [0], [0], [1], [0, 0, 1, 1], [], []>} : vector<8x8xf32>, vector<8x8xf32>, vector<8x8xf32> -> vector<8x8xf32>
    %c2_86 = arith.constant 2 : index
    %c0_87 = arith.constant 0 : index
    %c0_88 = arith.constant 0 : index
    %113 = vector.load %arg8[%c2_86, %c0_87, %c0_88] : memref<4x8x32xf32, #tpu.memory_space<vmem>>, vector<1x8x32xf32>
    %114 = vector.shape_cast %113 : vector<1x8x32xf32> to vector<8x32xf32>
    %cst_89 = arith.constant dense<0.000000e+00> : vector<8x32xf32>
    %115 = tpu.matmul %112, %114, %cst_89 {dimension_numbers = #tpu.dot_dimension_numbers<[1], [0], [0], [1], [0, 0, 1, 1], [], []>} : vector<8x8xf32>, vector<8x32xf32>, vector<8x32xf32> -> vector<8x32xf32>
    %116 = arith.addf %78, %115 : vector<8x32xf32>
    %c3 = arith.constant 3 : index
    %c0_90 = arith.constant 0 : index
    %c0_91 = arith.constant 0 : index
    %117 = vector.load %arg2[%c3, %c0_90, %c0_91] : memref<4x32x8xf32, #tpu.memory_space<vmem>>, vector<1x32x8xf32>
    %118 = vector.shape_cast %117 : vector<1x32x8xf32> to vector<32x8xf32>
    %cst_92 = arith.constant dense<0.000000e+00> : vector<8x8xf32>
    %119 = tpu.matmul %1, %118, %cst_92 {dimension_numbers = #tpu.dot_dimension_numbers<[1], [0], [0], [1], [0, 0, 1, 1], [], []>} : vector<8x32xf32>, vector<32x8xf32>, vector<8x8xf32> -> vector<8x8xf32>
    %c3_93 = arith.constant 3 : index
    %c0_94 = arith.constant 0 : index
    %c0_95 = arith.constant 0 : index
    %120 = vector.load %arg3[%c3_93, %c0_94, %c0_95] : memref<4x1x8xf32, #tpu.memory_space<vmem>>, vector<1x1x8xf32>
    %121 = vector.shape_cast %120 : vector<1x1x8xf32> to vector<1x8xf32>
    %122 = vector.broadcast %121 : vector<1x8xf32> to vector<8x8xf32>
    %123 = arith.addf %119, %122 : vector<8x8xf32>
    %c3_96 = arith.constant 3 : index
    %c0_97 = arith.constant 0 : index
    %c0_98 = arith.constant 0 : index
    %124 = vector.load %arg4[%c3_96, %c0_97, %c0_98] : memref<4x32x8xf32, #tpu.memory_space<vmem>>, vector<1x32x8xf32>
    %125 = vector.shape_cast %124 : vector<1x32x8xf32> to vector<32x8xf32>
    %cst_99 = arith.constant dense<0.000000e+00> : vector<8x8xf32>
    %126 = tpu.matmul %1, %125, %cst_99 {dimension_numbers = #tpu.dot_dimension_numbers<[1], [0], [0], [1], [0, 0, 1, 1], [], []>} : vector<8x32xf32>, vector<32x8xf32>, vector<8x8xf32> -> vector<8x8xf32>
    %c3_100 = arith.constant 3 : index
    %c0_101 = arith.constant 0 : index
    %c0_102 = arith.constant 0 : index
    %127 = vector.load %arg5[%c3_100, %c0_101, %c0_102] : memref<4x1x8xf32, #tpu.memory_space<vmem>>, vector<1x1x8xf32>
    %128 = vector.shape_cast %127 : vector<1x1x8xf32> to vector<1x8xf32>
    %129 = vector.broadcast %128 : vector<1x8xf32> to vector<8x8xf32>
    %130 = arith.addf %126, %129 : vector<8x8xf32>
    %c3_103 = arith.constant 3 : index
    %c0_104 = arith.constant 0 : index
    %c0_105 = arith.constant 0 : index
    %131 = vector.load %arg6[%c3_103, %c0_104, %c0_105] : memref<4x32x8xf32, #tpu.memory_space<vmem>>, vector<1x32x8xf32>
    %132 = vector.shape_cast %131 : vector<1x32x8xf32> to vector<32x8xf32>
    %cst_106 = arith.constant dense<0.000000e+00> : vector<8x8xf32>
    %133 = tpu.matmul %1, %132, %cst_106 {dimension_numbers = #tpu.dot_dimension_numbers<[1], [0], [0], [1], [0, 0, 1, 1], [], []>} : vector<8x32xf32>, vector<32x8xf32>, vector<8x8xf32> -> vector<8x8xf32>
    %c3_107 = arith.constant 3 : index
    %c0_108 = arith.constant 0 : index
    %c0_109 = arith.constant 0 : index
    %134 = vector.load %arg7[%c3_107, %c0_108, %c0_109] : memref<4x1x8xf32, #tpu.memory_space<vmem>>, vector<1x1x8xf32>
    %135 = vector.shape_cast %134 : vector<1x1x8xf32> to vector<1x8xf32>
    %136 = vector.broadcast %135 : vector<1x8xf32> to vector<8x8xf32>
    %137 = arith.addf %133, %136 : vector<8x8xf32>
    %cst_110 = arith.constant dense<0.000000e+00> : vector<8x8xf32>
    %138 = tpu.matmul %130, %123, %cst_110 {dimension_numbers = #tpu.dot_dimension_numbers<[1], [1], [0], [0], [0, 0, 1, 0], [], []>} : vector<8x8xf32>, vector<8x8xf32>, vector<8x8xf32> -> vector<8x8xf32>
    %cst_111 = arith.constant 0.176776692 : f32
    %139 = vector.broadcast %cst_111 : f32 to vector<8x8xf32>
    %140 = arith.mulf %138, %139 : vector<8x8xf32>
    %cst_112 = arith.constant dense<0xFF800000> : vector<8xf32>
    %141 = vector.multi_reduction <maximumf>, %140, %cst_112 [1] : vector<8x8xf32> to vector<8xf32>
    %142 = vector.shape_cast %141 : vector<8xf32> to vector<8x1xf32>
    %143 = vector.broadcast %142 : vector<8x1xf32> to vector<8x8xf32>
    %144 = arith.subf %140, %143 : vector<8x8xf32>
    %145 = math.exp %144 : vector<8x8xf32>
    %cst_113 = arith.constant dense<0.000000e+00> : vector<8xf32>
    %146 = vector.multi_reduction <add>, %145, %cst_113 [1] : vector<8x8xf32> to vector<8xf32>
    %147 = vector.shape_cast %146 : vector<8xf32> to vector<8x1xf32>
    %148 = vector.broadcast %147 : vector<8x1xf32> to vector<8x8xf32>
    %149 = arith.divf %145, %148 : vector<8x8xf32>
    %cst_114 = arith.constant dense<0.000000e+00> : vector<8x8xf32>
    %150 = tpu.matmul %149, %137, %cst_114 {dimension_numbers = #tpu.dot_dimension_numbers<[1], [0], [0], [1], [0, 0, 1, 1], [], []>} : vector<8x8xf32>, vector<8x8xf32>, vector<8x8xf32> -> vector<8x8xf32>
    %c3_115 = arith.constant 3 : index
    %c0_116 = arith.constant 0 : index
    %c0_117 = arith.constant 0 : index
    %151 = vector.load %arg8[%c3_115, %c0_116, %c0_117] : memref<4x8x32xf32, #tpu.memory_space<vmem>>, vector<1x8x32xf32>
    %152 = vector.shape_cast %151 : vector<1x8x32xf32> to vector<8x32xf32>
    %cst_118 = arith.constant dense<0.000000e+00> : vector<8x32xf32>
    %153 = tpu.matmul %150, %152, %cst_118 {dimension_numbers = #tpu.dot_dimension_numbers<[1], [0], [0], [1], [0, 0, 1, 1], [], []>} : vector<8x8xf32>, vector<8x32xf32>, vector<8x32xf32> -> vector<8x32xf32>
    %154 = arith.addf %116, %153 : vector<8x32xf32>
    %c0_119 = arith.constant 0 : index
    %c0_120 = arith.constant 0 : index
    %155 = vector.load %arg9[%c0_119, %c0_120] : memref<1x32xf32, #tpu.memory_space<vmem>>, vector<1x32xf32>
    %156 = vector.broadcast %155 : vector<1x32xf32> to vector<8x32xf32>
    %157 = arith.addf %154, %156 : vector<8x32xf32>
    %c0_121 = arith.constant 0 : index
    %c0_122 = arith.constant 0 : index
    %c0_123 = arith.constant 0 : index
    %158 = vector.load %arg10[%c0_121, %c0_122, %c0_123] : memref<1x8x32xf32, #tpu.memory_space<vmem>>, vector<1x8x32xf32>
    %159 = vector.shape_cast %158 : vector<1x8x32xf32> to vector<8x32xf32>
    %160 = vector.shape_cast %157 : vector<8x32xf32> to vector<1x8x32xf32>
    tpu.vector_store %arg10[%c0_121, %c0_122, %c0_123], %160 {strides = array<i32>} : memref<1x8x32xf32, #tpu.memory_space<vmem>>, vector<1x8x32xf32>,
    return
  }
  func.func @transform_0(%arg0: i32) -> (i32, i32, i32) {
    %c0_i32 = arith.constant 0 : i32
    %c0_i32_0 = arith.constant 0 : i32
    %c0_i32_1 = arith.constant 0 : i32
    return %arg0, %c0_i32, %c0_i32_0 : i32, i32, i32
  }
  func.func @transform_1(%arg0: i32) -> (i32, i32, i32) {
    %c0_i32 = arith.constant 0 : i32
    %c0_i32_0 = arith.constant 0 : i32
    %c0_i32_1 = arith.constant 0 : i32
    %c0_i32_2 = arith.constant 0 : i32
    return %c0_i32, %c0_i32_0, %c0_i32_1 : i32, i32, i32
  }
  func.func @transform_2(%arg0: i32) -> (i32, i32, i32) {
    %c0_i32 = arith.constant 0 : i32
    %c0_i32_0 = arith.constant 0 : i32
    %c0_i32_1 = arith.constant 0 : i32
    %c0_i32_2 = arith.constant 0 : i32
    return %c0_i32, %c0_i32_0, %c0_i32_1 : i32, i32, i32
  }
  func.func @transform_3(%arg0: i32) -> (i32, i32, i32) {
    %c0_i32 = arith.constant 0 : i32
    %c0_i32_0 = arith.constant 0 : i32
    %c0_i32_1 = arith.constant 0 : i32
    %c0_i32_2 = arith.constant 0 : i32
    return %c0_i32, %c0_i32_0, %c0_i32_1 : i32, i32, i32
  }
  func.func @transform_4(%arg0: i32) -> (i32, i32, i32) {
    %c0_i32 = arith.constant 0 : i32
    %c0_i32_0 = arith.constant 0 : i32
    %c0_i32_1 = arith.constant 0 : i32
    %c0_i32_2 = arith.constant 0 : i32
    return %c0_i32, %c0_i32_0, %c0_i32_1 : i32, i32, i32
  }
  func.func @transform_5(%arg0: i32) -> (i32, i32, i32) {
    %c0_i32 = arith.constant 0 : i32
    %c0_i32_0 = arith.constant 0 : i32
    %c0_i32_1 = arith.constant 0 : i32
    %c0_i32_2 = arith.constant 0 : i32
    return %c0_i32, %c0_i32_0, %c0_i32_1 : i32, i32, i32
  }
  func.func @transform_6(%arg0: i32) -> (i32, i32, i32) {
    %c0_i32 = arith.constant 0 : i32
    %c0_i32_0 = arith.constant 0 : i32
    %c0_i32_1 = arith.constant 0 : i32
    %c0_i32_2 = arith.constant 0 : i32
    return %c0_i32, %c0_i32_0, %c0_i32_1 : i32, i32, i32
  }
  func.func @transform_7(%arg0: i32) -> (i32, i32, i32) {
    %c0_i32 = arith.constant 0 : i32
    %c0_i32_0 = arith.constant 0 : i32
    %c0_i32_1 = arith.constant 0 : i32
    %c0_i32_2 = arith.constant 0 : i32
    return %c0_i32, %c0_i32_0, %c0_i32_1 : i32, i32, i32
  }
  func.func @transform_8(%arg0: i32) -> (i32, i32) {
    %c0_i32 = arith.constant 0 : i32
    %c0_i32_0 = arith.constant 0 : i32
    %c0_i32_1 = arith.constant 0 : i32
    return %c0_i32, %c0_i32_0 : i32, i32
  }
  func.func @transform_9(%arg0: i32) -> (i32, i32, i32) {
    %c0_i32 = arith.constant 0 : i32
    %c0_i32_0 = arith.constant 0 : i32
    %c0_i32_1 = arith.constant 0 : i32
    return %arg0, %c0_i32, %c0_i32_0 : i32, i32, i32
  }
}

</mosaic_0001>

<bundles_post_ra>
// kernel: tpu_custom_call.1
= control target key start
LH: loop header
LB: loop body
LE: loop exit
PB: predicated region body
PF: predicated region fallthrough
CT: control target
= control target key end

     0   :  { %14 = vsyncpa [#allocation3], 0  ;;  %s3407_s0 = inlined_call_operand.vmem [shape: f32[2,8,32], index: 0, kind: input, shape index: {}]   ;;  %s3408_s1 = inlined_call_operand.vmem [shape: f32[4,32,8], index: 1, kind: input, shape index: {}]   ;;  %s3409_s2 = inlined_call_operand.vmem [shape: f32[4,1,8], index: 2, kind: input, shape index: {}]   ;;  %s3410_s3 = inlined_call_operand.vmem [shape: f32[4,32,8], index: 3, kind: input, shape index: {}]   ;;  %s3411_s4 = inlined_call_operand.vmem [shape: f32[4,1,8], index: 4, kind: input, shape index: {}]   ;;  %s3412_s5 = inlined_call_operand.vmem [shape: f32[4,32,8], index: 5, kind: input, shape index: {}]   ;;  %s3413_s6 = inlined_call_operand.vmem [shape: f32[4,1,8], index: 6, kind: input, shape index: {}]   ;;  %s3414_s7 = inlined_call_operand.vmem [shape: f32[4,8,32], index: 7, kind: input, shape index: {}]   ;;  %s3415_s8 = inlined_call_operand.vmem [shape: f32[1,32], index: 8, kind: input, shape index: {}]   ;;  %s3416_s9 = inlined_call_operand.hbm [shape: f32[2,8,32], index: 9, kind: output, shape index: {}]  }
   0x1   :  { %16 = vsyncpa [#allocation3 + $0x1], 0  ;;  %s2974_s30 = smov 0   ;;  %s2976_s10 = smov 0  }
   0x2   :  { %s2978_s11 = smov 0   ;;  %s2980_s12 = smov 0  }
   0x3 LB: > { %s2995_s13 = sadd.s32 4294967295, %s2918_s12   ;;  %s2351_s14 = sadd.s32 4294967294, %s2918_s12   ;;  %s2918_s12 = sphi %s2980_s12, %s3422_s12   ;;  %s2914_s11 = sphi %s2978_s11, %s3421_s11   ;;  %s2910_s10 = sphi %s2976_s10, %s3420_s10   ;;  %s2906_s30 = sphi %s2974_s30, %s3419_s30  }
   0x4   : > { %s2999_s15 = sadd.s32 1, %s2918_s12   ;;  %s223_s16 = sadd.s32 1, %s2914_s11 }
   0x5   : > { %s220_s17 = ssub.s32 %s2918_s12, %s2999_s15  ;;  %p233_p0 = scmp.ne.s32.totalorder %s2914_s11, %s2910_s10 }
   0x6   : > { %p221_p1 = scmp.eq.s32.totalorder %s220_s17, 0  ;;  %p234_p2 = scmp.eq.s32.totalorder %s2995_s13, 1 }
   0x7   : > { %p239_p3 = scmp.ne.s32.totalorder %s2910_s10, %s2906_s30  ;;  %p240_p4 = scmp.eq.s32.totalorder %s2351_s14, 1 }
   0x8   : > { %s3010_s18 = scalar_select %p221_p1, %s2914_s11, %s223_s16  }
   0x9   : > { %p3012_p5 = por %p234_p2, %p233_p0  ;;  %p3016_p6 = por %p240_p4, %p239_p3 }
   0xa   : > { %p2354_p7 = scmp.ge.s32.totalorder %s2918_s12, 1  ;;  %p289_p8 = scmp.lt.s32.totalorder %s2918_s12, 3 }
   0xc   : > { %p290_p9 = pnand %p2354_p7, %p289_p8 }
   0xd   : > { %v329_v0 = vld [vmem:[%s3408_s1] sm:$0xff] (!%p290_p9)  ;;  %v330_v1 = vld [vmem:[%s3408_s1 + $0x8] sm:$0xff] (!%p290_p9)  ;;  %v2920_v3 = vmov (!%p290_p9), 0.0|0.0   ;;  %v331_v6 = vld [vmem:[%s3408_s1 + $0x10] sm:$0xff] (!%p290_p9)  ;;  %p324_p10 = scmp.lt.s32.totalorder (!%p290_p9), %s2995_s13, 1  ;;  %vm2921_vm0 = vmmov (!%p290_p9), 0  }
   0xe   : > { %293 = sbr.rel (%p290_p9) target bundleno = 3890 (0xf32), region = 56  ;;  %v414_v2 = vld [vmem:[%s3410_s3] sm:$0xff] (!%p290_p9)  ;;  %2726 = vmatprep.subr.bf16.mxu0 (!%p290_p9), %v2920_v3  ;;  %v2727_v4 = vpack.c.bf16 (!%p290_p9), %v330_v1, %v329_v0  ;;  %2732 = vmatprep.subr.bf16.mxu1 (!%p290_p9), %v2920_v3  ;;  %v415_v5 = vld [vmem:[%s3410_s3 + $0x8] sm:$0xff] (!%p290_p9)  ;;  %v332_v7 = vld [vmem:[%s3408_s1 + $0x18] sm:$0xff] (!%p290_p9)  ;;  %v2922_v9 = vmov (!%p290_p9), 0.0   ;;  %vm340_vm1 = vcmask (!%p290_p9), 261120  }
   0xf   : > { %v2733_v8 = vpack.c.bf16 (!%p290_p9), %v415_v5, %v414_v2  ;;  %2542 = vmatprep.mubr.msk.f32.mxu0 (!%p290_p9), %vm2921_vm0, %v2922_v9  ;;  %v416_v10 = vld [vmem:[%s3410_s3 + $0x10] sm:$0xff] (!%p290_p9)  ;;  %v417_v11 = vld [vmem:[%s3410_s3 + $0x18] sm:$0xff] (!%p290_p9)  ;;  %2553 = vmatprep.mubr.msk.f32.mxu1 (!%p290_p9), %vm2921_vm0, %v2922_v9  ;;  %v2730_v12 = vpack.c.bf16 (!%p290_p9), %v332_v7, %v331_v6  ;;  %v2357_v15 = vld [vmem:[%s3409_s2] ss:$0 sm:$0xff] (!%p290_p9)  ;;  %vm576_vm2 = vcmask (!%p290_p9), 64512   ;;  %s321_s22 = sand.u32 (!%p290_p9), 1, %s2910_s10  }
  0x10   : > { %2728 = vmatpush3.bf16.msra.mxu0 (!%p290_p9), %v2727_v4  ;;  %v2736_v13 = vpack.c.bf16 (!%p290_p9), %v417_v11, %v416_v10  ;;  %v2359_v16 = vld [vmem:[%s3411_s4] ss:$0 sm:$0xff] (!%p290_p9)  ;;  %v496_v24 = vld [vmem:[%s3412_s5 + $0x8] sm:$0xff] (!%p290_p9)  ;;  %v497_v25 = vld [vmem:[%s3412_s5 + $0x10] sm:$0xff] (!%p290_p9)  ;;  %s2355_s23 = sshll.u32 (!%p290_p9), %s321_s22, 3  ;;  %s2279_s17 = scalar_lea.sflag (!%p290_p9), [#allocation3], %s321_s22 }
  0x11   : > { %2734 = vmatpush3.bf16.msra.mxu1 (!%p290_p9), %v2733_v8  ;;  %2729 = vmatprep.subr.bf16.mxu0 (!%p290_p9), %v2920_v3  ;;  %v495_v23 = vld [vmem:[%s3412_s5] sm:$0xff] (!%p290_p9)  ;;  %v498_v27 = vld [vmem:[%s3412_s5 + $0x18] sm:$0xff] (!%p290_p9)  ;;  %v2367_v39 = vld [vmem:[%s3408_s1 + $0x28] sm:$0xff] (!%p290_p9)  ;;  %s323_s27 = scalar_lea.vmem (!%p290_p9), [#allocation2], %s2355_s23 }
  0x12   : > { %2735 = vmatprep.subr.bf16.mxu1 (!%p290_p9), %v2920_v3  ;;  %v2739_v26 = vpack.c.bf16 (!%p290_p9), %v496_v24, %v495_v23  ;;  %v2742_v28 = vpack.c.bf16 (!%p290_p9), %v498_v27, %v497_v25  ;;  %v2366_v38 = vld [vmem:[%s3408_s1 + $0x20] sm:$0xff] (!%p290_p9)  ;;  %v2368_v45 = vld [vmem:[%s3408_s1 + $0x30] sm:$0xff] (!%p290_p9)  ;;  %v2369_v46 = vld [vmem:[%s3408_s1 + $0x38] sm:$0xff] (!%p290_p9)  ;;  %s2292_s28 = sshll.u32 (!%p290_p9), %s323_s27, 4  ;;  %s3366_s28 = int_to_ptr.vmem [resolvable:$true] %s2292_s28 }
  0x13   : > { %v2745_v41 = vpack.c.bf16 (!%p290_p9), %v2367_v39, %v2366_v38  ;;  %v2361_v42 = vld [vmem:[%s3413_s6] ss:$0 sm:$0xff] (!%p290_p9)  ;;  %v2748_v47 = vpack.c.bf16 (!%p290_p9), %v2369_v46, %v2368_v45  ;;  %v2374_v50 = vld [vmem:[%s3410_s3 + $0x28] sm:$0xff] (!%p290_p9)  ;;  %v2375_v54 = vld [vmem:[%s3410_s3 + $0x30] sm:$0xff] (!%p290_p9)  ;;  %s2856_s21 = scalar_lea.vmem (!%p290_p9), %s3366_s28, 128 }
  0x14   : > { %2731 = vmatpush3.bf16.msra.mxu0 (!%p290_p9), %v2730_v12  ;;  %v2373_v49 = vld [vmem:[%s3410_s3 + $0x20] sm:$0xff] (!%p290_p9)  ;;  %v2376_v55 = vld [vmem:[%s3410_s3 + $0x38] sm:$0xff] (!%p290_p9)  ;;  %v2381_v5 = vld [vmem:[%s3412_s5 + $0x28] sm:$0xff] (!%p290_p9)  ;;  %p2857_p11 = scmp.ne.s32.totalorder (!%p290_p9), %s3366_s28, %s2856_s21 }
  0x15   : > { %s325_s25 = scalar_select %p324_p10, %s2995_s13, 1  ;;  %2737 = vmatpush3.bf16.msra.mxu1 %v2736_v13  ;;  %2738 = vmatprep.subr.bf16.mxu0 %v2920_v3  ;;  %v2751_v52 = vpack.c.bf16 %v2374_v50, %v2373_v49  ;;  %v2754_v56 = vpack.c.bf16 %v2376_v55, %v2375_v54  ;;  %v2371_v57 = vld [vmem:[%s3409_s2 + $0x1] ss:$0 sm:$0xff]  ;;  %v2382_v6 = vld [vmem:[%s3412_s5 + $0x30] sm:$0xff]  ;;  %v2383_v8 = vld [vmem:[%s3412_s5 + $0x38] sm:$0xff] }
  0x16   : > { %2567 = vmatprep.subr.mxu1 %v2922_v9  ;;  %v2378_v63 = vld [vmem:[%s3411_s4 + $0x1] ss:$0 sm:$0xff]  ;;  %v2760_v10 = vpack.c.bf16 %v2383_v8, %v2382_v6  ;;  %v2390_v25 = vld [vmem:[%s3414_s7 + $0x8] sm:$0xff]  ;;  %v2395_v39 = vld [vmem:[%s3408_s1 + $0x50] sm:$0xff]  ;;  %p2858_p12 = pnand %p2857_p11, %p3012_p5 }
  0x17   : > { %s2356_s26 = sshll.u32 %s325_s25, 3  ;;  %v2380_v4 = vld [vmem:[%s3412_s5 + $0x20] sm:$0xff] }
  0x18   : > { %s327_s29 = scalar_lea.vmem %s3407_s0, %s2356_s26  ;;  %v2757_v7 = vpack.c.bf16 %v2381_v5, %v2380_v4  ;;  %s2447_s26 = sshll.u32 %s2995_s13, 7 }
  0x19   : > { %v3059_v14 = vld [vmem:[%s327_s29] sm:$0xff]  ;;  %s3364_s16 = scalar_lea.hbm %s3416_s9, %s2447_s26  ;;  %p2859_p13 = pneg %p2858_p12 }
  0x1a   : > { %2543 = vmatmul.mubr.msk.f32.vlgmr.msra.gmra.mrb[0].mxu0 %vm340_vm1, %v3059_v14  ;;  %2554 = vmatmul.mubr.msk.f32.vlgmr.msra.gmra.mrb[0].mxu1 %vm340_vm1, %v3059_v14  ;;  %s2923_s13 = smov [#allocation2]  }
  0x1b   : > { %2564 = vmatprep.mubr.msk.f32.mxu0 %vm2921_vm0, %v2922_v9  ;;  %2569 = vmatprep.mubr.msk.f32.mxu1 %vm2921_vm0, %v2922_v9  ;;  %s2860_s23 = sshll.u32 %s2923_s13, 4  ;;  %s2861_s23 = int_to_ptr.vmem [resolvable:$false] %s2860_s23 }
  0x1c   : > { %2740 = vmatpush3.bf16.msra.mxu0 %v2739_v26  ;;  %s2862_s24 = scalar_lea.vmem %s2861_s23, 256  ;;  %p2863_p0 = scmp.lt.s32.totalorder %s3366_s28, %s2861_s23 }
  0x1d   : > { %2741 = vmatprep.subr.bf16.mxu0 %v2920_v3  ;;  %p2864_p1 = scmp.lt.s32.totalorder %s2862_s24, %s2856_s21 }
  0x1f   : > { %p2865_p2 = por %p2864_p1, %p2863_p0 }
  0x20   : > { %2743 = vmatpush3.bf16.msra.mxu0 %v2742_v28 }
  0x21   : > { %2744 = vmatprep.subr.bf16.mxu0 %v2920_v3  ;;  %p2866_p3 = pnand %p2865_p2, %p2859_p13 }
  0x23   : > { %2565 = vmatmul.mubr.msk.f32.vlgmr.msra.gmra.mrb[2].mxu0 %vm340_vm1, %v3059_v14 }
  0x24   : > { %2585 = vmatprep.mubr.msk.f32.mxu0 %vm2921_vm0, %v2922_v9  ;;  %2746 = vmatpush3.bf16.msra.mxu0 %v2745_v41 }
  0x25   : > { %2747 = vmatprep.subr.bf16.mxu0 %v2920_v3 }
  0x28   : > { %2749 = vmatpush3.bf16.msra.mxu0 %v2748_v47 }
  0x29   : > { %2756 = vmatprep.subr.bf16.mxu0 %v2920_v3 }
  0x2b   : > { %2586 = vmatmul.mubr.msk.f32.vlgmr.msra.gmra.mrb[4].mxu0 %vm340_vm1, %v3059_v14 }
  0x2c   : > { %2607 = vmatprep.mubr.msk.f32.mxu0 %vm2921_vm0, %v2922_v9  ;;  %2758 = vmatpush3.bf16.msra.mxu0 %v2757_v7 }
  0x2d   : > { %2759 = vmatprep.subr.bf16.mxu0 %v2920_v3 }
  0x30   : > { %2761 = vmatpush3.bf16.msra.mxu0 %v2760_v10 }
  0x31   : > { %2620 = vmatprep.subr.mxu0 %v2922_v9 }
  0x33   : > { %2608 = vmatmul.mubr.msk.f32.vlgmr.msra.gmra.mrb[6].mxu0 %vm340_vm1, %v3059_v14 }
  0x34   : > { %2622 = vmatprep.mubr.msk.f32.mxu0 %vm2921_vm0, %v2922_v9  ;;  %2621 = vmatpush3.msra.mxu0 %v2390_v25  ;;  %v2426_v25 = vld [vmem:[%s3410_s3 + $0x60] sm:$0xff] }
  0x35   : > { %2762 = vmatprep.subr.bf16.mxu0 %v2920_v3 }
  0xed   : > { %v410_v17 = vpop.f32.mrb[0].mxu0  ;;  %v491_v20 = vpop.f32.mrb[0].mxu1 }
  0xee   : > { %v411_v18 = vadd.f32 %v2357_v15, %v410_v17  ;;  %v2544_v19 = vpop.f32.mrb[1].mxu0  ;;  %v492_v21 = vadd.f32 %v2359_v16, %v491_v20  ;;  %v2555_v22 = vpop.f32.mrb[1].mxu1 }
  0xef   : > { %v2385_v22 = vld [vmem:[%s3413_s6 + $0x1] ss:$0 sm:$0xff] }
  0xf0   : > { %2568 = vmatpush3.xpose.msk.msra.mxu1 %vm576_vm2, %v411_v18 }
  0xf1   : > { %2572 = vmatprep.subr.mxu1 %v2922_v9 }
  0xf3   : > { %2570 = vmatmul.mubr.msk.f32.vlgmr.msra.gmra.mrb[2].mxu1 %vm576_vm2, %v492_v21 }
  0xf4   : > { %2574 = vmatprep.mubr.msk.f32.mxu1 %vm2921_vm0, %v2922_v9 }
  0xf6   : > { %v572_v40 = vpop.f32.mrb[2].mxu0 }
  0xf7   : > { %v2566_v43 = vpop.f32.mrb[3].mxu0  ;;  %v573_v44 = vadd.f32 %v2361_v42, %v572_v40  ;;  %v2396_v40 = vld [vmem:[%s3408_s1 + $0x58] sm:$0xff] }
  0xf8   : > { %v2766_v43 = vpack.c.bf16 %v2396_v40, %v2395_v39  ;;  %v2431_v40 = vld [vmem:[%s3411_s4 + $0x3] ss:$0 sm:$0xff] }
  0xf9   : > { %2573 = vmatpush3.msra.mxu1 %v573_v44 }
  0xfa   : > { %2750 = vmatprep.subr.bf16.mxu1 %v2920_v3 }
  0xfe   : > { %v818_v58 = vpop.f32.mrb[4].mxu0 }
  0xff   : > { %v819_v59 = vadd.f32 %v2371_v57, %v818_v58  ;;  %v2587_v60 = vpop.f32.mrb[5].mxu0  ;;  %v2407_v57 = vld [vmem:[%s3412_s5 + $0x40] sm:$0xff]  ;;  %v2408_v58 = vld [vmem:[%s3412_s5 + $0x48] sm:$0xff] }
 0x100   : > { %v2775_v60 = vpack.c.bf16 %v2408_v58, %v2407_v57 }
 0x106   : > { %v984_v21 = vpop.f32.mrb[6].mxu0 }
 0x107   : > { %v2609_v23 = vpop.f32.mrb[7].mxu0  ;;  %v985_v24 = vadd.f32 %v2385_v22, %v984_v21  ;;  %v2421_v22 = vld [vmem:[%s3408_s1 + $0x70] sm:$0xff] }
 0x108   : > { %v2422_v23 = vld [vmem:[%s3408_s1 + $0x78] sm:$0xff] }
 0x1c6   : > { %v649_v29 = vpop.f32.mrb[2].mxu1 }
 0x1c7   : > { %v653_v30 = vmul.f32 0.17677669, %v649_v29  ;;  %v2571_v31 = vpop.f32.mrb[3].mxu1  ;;  %v738_v29 = vld [vmem:[%s3414_s7] sm:$0xff] }
 0x1c8   : > { %v2401_v31 = vld [vmem:[%s3410_s3 + $0x48] sm:$0xff] }
 0x1c9   : > { %v654_v32 = vsel %vm576_vm2, %v653_v30, -inf }
 0x1ca   : > { %655 = vmax.xlane.f32.xlu0 %v654_v32 }
 0x257   : > { %v656_v33 = vpop.xlane.xlu0 %655 }
 0x258   : > { %v657_v34 = vsub.f32 %v653_v30, %v656_v33  ;;  %v2400_v30 = vld [vmem:[%s3410_s3 + $0x40] sm:$0xff]  ;;  %v2402_v33 = vld [vmem:[%s3410_s3 + $0x50] sm:$0xff] }
 0x259   : > { %v2769_v32 = vpack.c.bf16 %v2401_v31, %v2400_v30 }
 0x25a   : > { %v658_v35 = vmul.f32 1.442695, %v657_v34  ;;  %v2403_v34 = vld [vmem:[%s3410_s3 + $0x58] sm:$0xff] }
 0x25c   : > { %2840 = vpow2.f32 %v658_v35  ;;  %v2772_v35 = vpack.c.bf16 %v2403_v34, %v2402_v33  ;;  %v2424_v33 = vld [vmem:[%s3409_s2 + $0x3] ss:$0 sm:$0xff] }
 0x266   : > { %v2841_v36 = vpop.eup %2840 }
 0x267   : > { %v660_v37 = vsel %vm576_vm2, %v2841_v36, 0.0 }
 0x268   : > { %661 = vadd.xlane.f32.xlu0 %v660_v37  ;;  %v2394_v37 = vld [vmem:[%s3408_s1 + $0x48] sm:$0xff] }
 0x2f5   : > { %v662_v48 = vpop.xlane.xlu0 %661 }
 0x2f6   : > { %2842 = vrcp.f32 %v662_v48 }
 0x300   : > { %v2843_v51 = vpop.eup %2842 }
 0x301   : > { %v664_v53 = vmul.f32 %v2843_v51, %v2841_v36  ;;  %v2393_v36 = vld [vmem:[%s3408_s1 + $0x40] sm:$0xff] }
 0x302   : > { %v2763_v38 = vpack.c.bf16 %v2394_v37, %v2393_v36  ;;  %v2398_v51 = vld [vmem:[%s3409_s2 + $0x2] ss:$0 sm:$0xff] }
 0x303   : > { %2575 = vmatmul.mubr.msk.f32.vlgmr.msra.gmra.mrb[4].mxu1 %vm576_vm2, %v664_v53 }
 0x304   : > { %2752 = vmatpush3.bf16.msra.mxu1 %v2751_v52  ;;  %2596 = vmatprep.mubr.msk.f32.mxu1 %vm2921_vm0, %v2922_v9  ;;  %v2405_v52 = vld [vmem:[%s3411_s4 + $0x2] ss:$0 sm:$0xff] }
 0x305   : > { %2753 = vmatprep.subr.bf16.mxu1 %v2920_v3 }
 0x308   : > { %2755 = vmatpush3.bf16.msra.mxu1 %v2754_v56 }
 0x309   : > { %2610 = vmatprep.subr.mxu1 %v2922_v9 }
 0x30b   : > { %2597 = vmatmul.mubr.msk.f32.vlgmr.msra.gmra.mrb[6].mxu1 %vm340_vm1, %v3059_v14 }
 0x30c   : > { %2612 = vmatprep.mubr.msk.f32.mxu1 %vm2921_vm0, %v2922_v9 }
 0x311   : > { %2611 = vmatpush3.xpose.msk.msra.mxu1 %vm576_vm2, %v819_v59  ;;  %v2409_v59 = vld [vmem:[%s3412_s5 + $0x50] sm:$0xff] }
 0x312   : > { %2615 = vmatprep.subr.mxu1 %v2922_v9 }
 0x3d6   : > { %v734_v61 = vpop.f32.mrb[4].mxu1 }
 0x3d7   : > { %v2576_v62 = vpop.f32.mrb[5].mxu1 }
 0x3de   : > { %v901_v0 = vpop.f32.mrb[6].mxu1 }
 0x3df   : > { %v902_v1 = vadd.f32 %v2378_v63, %v901_v0  ;;  %v2598_v2 = vpop.f32.mrb[7].mxu1 }
 0x3e1   : > { %2613 = vmatmul.mubr.msk.f32.vlgmr.msra.gmra.mrb[8].mxu1 %vm576_vm2, %v902_v1 }
 0x3e2   : > { %2617 = vmatprep.mubr.msk.f32.mxu1 %vm2921_vm0, %v2922_v9  ;;  %2616 = vmatpush3.msra.mxu1 %v985_v24  ;;  %v2784_v24 = vpack.c.bf16 %v2422_v23, %v2421_v22 }
 0x3e3   : > { %2625 = vmatprep.subr.mxu1 %v2922_v9 }
 0x4b4   : > { %v1060_v11 = vpop.f32.mrb[8].mxu1 }
 0x4b5   : > { %v1064_v12 = vmul.f32 0.17677669, %v1060_v11  ;;  %v2614_v13 = vpop.f32.mrb[9].mxu1  ;;  %v2412_v11 = vld [vmem:[%s3413_s6 + $0x2] ss:$0 sm:$0xff] }
 0x4b7   : > { %v1065_v15 = vsel %vm576_vm2, %v1064_v12, -inf }
 0x4b8   : > { %1066 = vmax.xlane.f32.xlu1 %v1065_v15  ;;  %v2417_v15 = vld [vmem:[%s3414_s7 + $0x10] sm:$0xff] }
 0x545   : > { %v1067_v16 = vpop.xlane.xlu1 %1066 }
 0x546   : > { %v1068_v17 = vsub.f32 %v1064_v12, %v1067_v16 }
 0x548   : > { %v1069_v18 = vmul.f32 1.442695, %v1068_v17  ;;  %v2419_v17 = vld [vmem:[%s3408_s1 + $0x60] sm:$0xff] }
 0x54a   : > { %2844 = vpow2.f32 %v1069_v18  ;;  %v2420_v18 = vld [vmem:[%s3408_s1 + $0x68] sm:$0xff] }
 0x554   : > { %v2845_v19 = vpop.eup %2844 }
 0x555   : > { %v1071_v20 = vsel %vm576_vm2, %v2845_v19, 0.0 }
 0x556   : > { %1072 = vadd.xlane.f32.xlu1 %v1071_v20  ;;  %v2781_v20 = vpack.c.bf16 %v2420_v18, %v2419_v17 }
 0x5e3   : > { %v1073_v26 = vpop.xlane.xlu1 %1072 }
 0x5e4   : > { %2846 = vrcp.f32 %v1073_v26  ;;  %v2427_v26 = vld [vmem:[%s3410_s3 + $0x68] sm:$0xff] }
 0x5ee   : > { %v2847_v27 = vpop.eup %2846 }
 0x5ef   : > { %v1075_v28 = vmul.f32 %v2847_v27, %v2845_v19  ;;  %v2787_v27 = vpack.c.bf16 %v2427_v26, %v2426_v25 }
 0x5f1   : > { %2618 = vmatmul.mubr.msk.f32.vlgmr.msra.gmra.mrb[10].mxu1 %vm576_vm2, %v1075_v28  ;;  %v2428_v28 = vld [vmem:[%s3410_s3 + $0x70] sm:$0xff] }
 0x5f2   : > { %2626 = vmatpush3.msra.mxu1 %v738_v29  ;;  %2627 = vmatprep.mubr.msk.f32.mxu1 %vm2921_vm0, %v2922_v9  ;;  %v2429_v29 = vld [vmem:[%s3410_s3 + $0x78] sm:$0xff] }
 0x5f3   : > { %2768 = vmatprep.subr.bf16.mxu1 %v2920_v3 }
 0x5f5   : > { %2628 = vmatmul.mubr.msk.f32.vlgmr.msra.gmra.mrb[12].mxu1 %vm576_vm2, %v734_v61  ;;  %v2410_v61 = vld [vmem:[%s3412_s5 + $0x58] sm:$0xff] }
 0x5f6   : > { %2649 = vmatprep.mubr.msk.f32.mxu1 %vm2921_vm0, %v2922_v9  ;;  %2770 = vmatpush3.bf16.msra.mxu1 %v2769_v32  ;;  %v2778_v62 = vpack.c.bf16 %v2410_v61, %v2409_v59  ;;  %v2790_v32 = vpack.c.bf16 %v2429_v29, %v2428_v28 }
 0x5f7   : > { %2771 = vmatprep.subr.bf16.mxu1 %v2920_v3 }
 0x5fa   : > { %2773 = vmatpush3.bf16.msra.mxu1 %v2772_v35 }
 0x5fb   : > { %2663 = vmatprep.subr.mxu1 %v2922_v9 }
 0x5fd   : > { %2650 = vmatmul.mubr.msk.f32.vlgmr.msra.gmra.mrb[14].mxu1 %vm340_vm1, %v3059_v14 }
 0x5fe   : > { %2665 = vmatprep.mubr.msk.f32.mxu1 %vm2921_vm0, %v2922_v9 }
 0x6c4   : > { %v1145_v41 = vpop.f32.mrb[10].mxu1 }
 0x6c5   : > { %v2619_v42 = vpop.f32.mrb[11].mxu1  ;;  %2623 = vmatmul.mubr.msk.f32.vlgmr.msra.gmra.mrb[8].mxu0 %vm576_vm2, %v1145_v41 }
 0x6c6   : > { %2764 = vmatpush3.bf16.msra.mxu0 %v2763_v38  ;;  %2638 = vmatprep.mubr.msk.f32.mxu0 %vm2921_vm0, %v2922_v9 }
 0x6c7   : > { %2765 = vmatprep.subr.bf16.mxu0 %v2920_v3 }
 0x6c8   : > { %v1293_v44 = vpop.f32.mrb[12].mxu1 }
 0x6c9   : > { %v2629_v45 = vpop.f32.mrb[13].mxu1 }
 0x6ca   : > { %2767 = vmatpush3.bf16.msra.mxu0 %v2766_v43  ;;  %v2434_v45 = vld [vmem:[%s3412_s5 + $0x68] sm:$0xff] }
 0x6cb   : > { %2774 = vmatprep.subr.bf16.mxu0 %v2920_v3 }
 0x6cd   : > { %2639 = vmatmul.mubr.msk.f32.vlgmr.msra.gmra.mrb[10].mxu0 %vm340_vm1, %v3059_v14 }
 0x6ce   : > { %2660 = vmatprep.mubr.msk.f32.mxu0 %vm2921_vm0, %v2922_v9  ;;  %2776 = vmatpush3.bf16.msra.mxu0 %v2775_v60  ;;  %v2443_v60 = vld [vmem:[%s3414_s7 + $0x18] sm:$0xff] }
 0x6cf   : > { %2777 = vmatprep.subr.bf16.mxu0 %v2920_v3 }
 0x6d0   : > { %v1459_v46 = vpop.f32.mrb[14].mxu1 }
 0x6d1   : > { %v2651_v47 = vpop.f32.mrb[15].mxu1  ;;  %v1460_v56 = vadd.f32 %v2405_v52, %v1459_v46  ;;  %v2435_v46 = vld [vmem:[%s3412_s5 + $0x70] sm:$0xff] }
 0x6d2   : > { %2779 = vmatpush3.bf16.msra.mxu0 %v2778_v62 }
 0x6d3   : > { %2673 = vmatprep.subr.mxu0 %v2922_v9 }
 0x6d5   : > { %2661 = vmatmul.mubr.msk.f32.vlgmr.msra.gmra.mrb[12].mxu0 %vm340_vm1, %v3059_v14 }
 0x6d6   : > { %2675 = vmatprep.mubr.msk.f32.mxu0 %vm2921_vm0, %v2922_v9  ;;  %2674 = vmatpush3.msra.mxu0 %v2417_v15 }
 0x6d7   : > { %2786 = vmatprep.subr.bf16.mxu0 %v2920_v3 }
 0x798   : > { %v1220_v48 = vpop.f32.mrb[8].mxu0 }
 0x799   : > { %v3233_v49 = vadd.f32 %v1293_v44, %v1220_v48  ;;  %v2624_v50 = vpop.f32.mrb[9].mxu0  ;;  %v2433_v44 = vld [vmem:[%s3412_s5 + $0x60] sm:$0xff]  ;;  %v2436_v48 = vld [vmem:[%s3412_s5 + $0x78] sm:$0xff] }
 0x79a   : > { %v2793_v47 = vpack.c.bf16 %v2434_v45, %v2433_v44 }
 0x7a0   : > { %v1376_v53 = vpop.f32.mrb[10].mxu0 }
 0x7a1   : > { %v1377_v54 = vadd.f32 %v2398_v51, %v1376_v53  ;;  %v2640_v55 = vpop.f32.mrb[11].mxu0 }
 0x7a3   : > { %2664 = vmatpush3.xpose.msk.msra.mxu1 %vm576_vm2, %v1377_v54 }
 0x7a4   : > { %2668 = vmatprep.subr.mxu1 %v2922_v9 }
 0x7a6   : > { %2666 = vmatmul.mubr.msk.f32.vlgmr.msra.gmra.mrb[16].mxu1 %vm576_vm2, %v1460_v56 }
 0x7a7   : > { %2670 = vmatprep.mubr.msk.f32.mxu1 %vm2921_vm0, %v2922_v9 }
 0x7a8   : > { %v1542_v10 = vpop.f32.mrb[12].mxu0 }
 0x7a9   : > { %v2662_v12 = vpop.f32.mrb[13].mxu0  ;;  %v1543_v13 = vadd.f32 %v2412_v11, %v1542_v10 }
 0x7ab   : > { %2669 = vmatpush3.msra.mxu1 %v1543_v13 }
 0x7ac   : > { %2780 = vmatprep.subr.bf16.mxu1 %v2920_v3 }
 0x879   : > { %v1618_v63 = vpop.f32.mrb[16].mxu1 }
 0x87a   : > { %v1622_v0 = vmul.f32 0.17677669, %v1618_v63  ;;  %v2667_v1 = vpop.f32.mrb[17].mxu1 }
 0x87c   : > { %v1623_v2 = vsel %vm576_vm2, %v1622_v0, -inf }
 0x87d   : > { %1624 = vmax.xlane.f32.xlu0 %v1623_v2 }
 0x90a   : > { %v1625_v4 = vpop.xlane.xlu0 %1624 }
 0x90b   : > { %v1626_v5 = vsub.f32 %v1622_v0, %v1625_v4  ;;  %v2445_v4 = vld [vmem:[%s3415_s8] ss:$0 sm:$0xff] }
 0x90d   : > { %v1627_v6 = vmul.f32 1.442695, %v1626_v5 }
 0x90f   : > { %2848 = vpow2.f32 %v1627_v6 }
 0x919   : > { %v2849_v7 = vpop.eup %2848 }
 0x91a   : > { %v1629_v8 = vsel %vm576_vm2, %v2849_v7, 0.0 }
 0x91b   : > { %1630 = vadd.xlane.f32.xlu1 %v1629_v8 }
 0x9a8   : > { %v1631_v16 = vpop.xlane.xlu1 %1630 }
 0x9a9   : > { %2850 = vrcp.f32 %v1631_v16 }
 0x9b3   : > { %v2851_v19 = vpop.eup %2850 }
 0x9b4   : > { %v1633_v21 = vmul.f32 %v2851_v19, %v2849_v7 }
 0x9b6   : > { %2671 = vmatmul.mubr.msk.f32.vlgmr.msra.gmra.mrb[18].mxu1 %vm576_vm2, %v1633_v21 }
 0x9b7   : > { %2782 = vmatpush3.bf16.msra.mxu1 %v2781_v20  ;;  %2686 = vmatprep.mubr.msk.f32.mxu1 %vm2921_vm0, %v2922_v9 }
 0x9b8   : > { %2783 = vmatprep.subr.bf16.mxu1 %v2920_v3 }
 0x9bb   : > { %2785 = vmatpush3.bf16.msra.mxu1 %v2784_v24 }
 0x9bc   : > { %2792 = vmatprep.subr.bf16.mxu1 %v2920_v3 }
 0x9be   : > { %2687 = vmatmul.mubr.msk.f32.vlgmr.msra.gmra.mrb[20].mxu1 %vm340_vm1, %v3059_v14 }
 0x9bf   : > { %2708 = vmatprep.mubr.msk.f32.mxu1 %vm2921_vm0, %v2922_v9  ;;  %2794 = vmatpush3.bf16.msra.mxu1 %v2793_v47 }
 0x9c0   : > { %2795 = vmatprep.subr.bf16.mxu1 %v2920_v3 }
 0xa89   : > { %v1703_v30 = vpop.f32.mrb[18].mxu1 }
 0xa8a   : > { %v2672_v31 = vpop.f32.mrb[19].mxu1  ;;  %2676 = vmatmul.mubr.msk.f32.vlgmr.msra.gmra.mrb[14].mxu0 %vm576_vm2, %v1703_v30 }
 0xa8b   : > { %2788 = vmatpush3.bf16.msra.mxu0 %v2787_v27  ;;  %2697 = vmatprep.mubr.msk.f32.mxu0 %vm2921_vm0, %v2922_v9 }
 0xa8c   : > { %2789 = vmatprep.subr.bf16.mxu0 %v2920_v3 }
 0xa8f   : > { %2791 = vmatpush3.bf16.msra.mxu0 %v2790_v32 }
 0xa90   : > { %2711 = vmatprep.subr.mxu0 %v2922_v9 }
 0xa91   : > { %v1862_v34 = vpop.f32.mrb[20].mxu1 }
 0xa92   : > { %2698 = vmatmul.mubr.msk.f32.vlgmr.msra.gmra.mrb[16].mxu0 %vm340_vm1, %v3059_v14  ;;  %v1863_v35 = vadd.f32 %v2424_v33, %v1862_v34  ;;  %v2688_v36 = vpop.f32.mrb[21].mxu1 }
 0xa93   : > { %2713 = vmatprep.mubr.msk.f32.mxu0 %vm2921_vm0, %v2922_v9 }
 0xa98   : > { %2712 = vmatpush3.xpose.msk.msra.mxu0 %vm576_vm2, %v1863_v35 }
 0xa99   : > { %2716 = vmatprep.subr.mxu0 %v2922_v9 }
 0xb5d   : > { %v1778_v37 = vpop.f32.mrb[14].mxu0 }
 0xb5e   : > { %v1782_v38 = vadd.f32 %v1778_v37, %v3233_v49  ;;  %v2677_v39 = vpop.f32.mrb[15].mxu0  ;;  %v2796_v49 = vpack.c.bf16 %v2436_v48, %v2435_v46 }
 0xb60   : > { %2797 = vmatpush3.bf16.msra.mxu1 %v2796_v49 }
 0xb61   : > { %2721 = vmatprep.subr.mxu1 %v2922_v9 }
 0xb63   : > { %2709 = vmatmul.mubr.msk.f32.vlgmr.msra.gmra.mrb[22].mxu1 %vm340_vm1, %v3059_v14 }
 0xb64   : > { %2723 = vmatprep.mubr.msk.f32.mxu1 %vm2921_vm0, %v2922_v9  ;;  %2722 = vmatpush3.msra.mxu1 %v2443_v60 }
 0xb65   : > { %v1945_v41 = vpop.f32.mrb[16].mxu0 }
 0xb66   : > { %v1946_v42 = vadd.f32 %v2431_v40, %v1945_v41  ;;  %v2699_v43 = vpop.f32.mrb[17].mxu0 }
 0xb68   : > { %2714 = vmatmul.mubr.msk.f32.vlgmr.msra.gmra.mrb[18].mxu0 %vm576_vm2, %v1946_v42 }
 0xb69   : > { %2718 = vmatprep.mubr.msk.f32.mxu0 %vm2921_vm0, %v2922_v9  ;;  %v2438_v9 = vld [vmem:[%s3413_s6 + $0x3] ss:$0 sm:$0xff] }
 0xc36   : > { %v2028_v58 = vpop.f32.mrb[22].mxu1 }
 0xc37   : > { %v2710_v14 = vpop.f32.mrb[23].mxu1  ;;  %v2029_v59 = vadd.f32 %v2438_v9, %v2028_v58 }
 0xc39   : > { %2717 = vmatpush3.msra.mxu0 %v2029_v59 }
 0xc3b   : > { %v2104_v50 = vpop.f32.mrb[18].mxu0 }
 0xc3c   : > { %v2108_v51 = vmul.f32 0.17677669, %v2104_v50  ;;  %v2715_v52 = vpop.f32.mrb[19].mxu0 }
 0xc3e   : > { %v2109_v53 = vsel %vm576_vm2, %v2108_v51, -inf }
 0xc3f   : > { %2110 = vmax.xlane.f32.xlu0 %v2109_v53 }
 0xccc   : > { %v2111_v54 = vpop.xlane.xlu0 %2110 }
 0xccd   : > { %v2112_v55 = vsub.f32 %v2108_v51, %v2111_v54 }
 0xccf   : > { %v2113_v56 = vmul.f32 1.442695, %v2112_v55 }
 0xcd1   : > { %2852 = vpow2.f32 %v2113_v56 }
 0xcdb   : > { %v2853_v3 = vpop.eup %2852 }
 0xcdc   : > { %v2115_v57 = vsel %vm576_vm2, %v2853_v3, 0.0 }
 0xcdd   : > { %2116 = vadd.xlane.f32.xlu1 %v2115_v57 }
 0xd6a   : > { %v2117_v61 = vpop.xlane.xlu1 %2116 }
 0xd6b   : > { %2854 = vrcp.f32 %v2117_v61 }
 0xd75   : > { %v2855_v62 = vpop.eup %2854 }
 0xd76   : > { %v2119_v63 = vmul.f32 %v2855_v62, %v2853_v3 }
 0xd78   : > { %2719 = vmatmul.mubr.msk.f32.vlgmr.msra.gmra.mrb[20].mxu0 %vm576_vm2, %v2119_v63 }
 0xe4b   : > { %v2189_v0 = vpop.f32.mrb[20].mxu0 }
 0xe4c   : > { %v2720_v1 = vpop.f32.mrb[21].mxu0  ;;  %2724 = vmatmul.mubr.msk.f32.vlgmr.msra.gmra.mrb[24].mxu1 %vm576_vm2, %v2189_v0 }
 0xf1f   : > { %v2264_v2 = vpop.f32.mrb[24].mxu1 }
 0xf20   : > { %v2268_v5 = vadd.f32 %v2264_v2, %v1782_v38  ;;  %v2725_v6 = vpop.f32.mrb[25].mxu1 }
 0xf22   : > { %v2276_v7 = vadd.f32 %v2445_v4, %v2268_v5 }
 0xf24   : > { %2277 = vst.msk [vmem:[%s323_s27] sm:$0xff] %vm340_vm1, %v2276_v7 }
 0xf25   : > { %2869 = shalt.err (!%p2866_p3)
}
 0xf26   : > { %s2870_s22 = scalar_lea.hbm %s3364_s16, 128  ;;  %s2874_s27 = scalar_lea.hbm %s3416_s9, 256 }
 0xf27   : > { %p2871_p4 = scmp.ne.s32.totalorder %s3364_s16, %s2870_s22  ;;  %p2875_p9 = scmp.lt.u32.totalorder %s3364_s16, %s3416_s9 }
 0xf28   : > { %p2876_p10 = scmp.lt.u32.totalorder %s2874_s27, %s2870_s22  ;;  %p2878_p12 = scmp.lt.u32.totalorder %s2870_s22, %s3364_s16 }
 0xf29   : > { %p2872_p7 = pnand %p2871_p4, %p3012_p5 }
 0xf2a   : > { %p2877_p11 = por %p2876_p10, %p2875_p9 }
 0xf2b   : > { %p2873_p8 = pneg %p2872_p7 }
 0xf2c   : > { %p2879_p13 = por %p2878_p12, %p2877_p11 }
 0xf2e   : > { %p2880_p0 = pnand %p2879_p13, %p2873_p8 }
 0xf30   : > { %2883 = shalt.err (!%p2880_p0)
}
 0xf31   : > { %2798 = dma.vmem_to_hbm [thread:$0]  (%p3012_p5), %s3366_s28, 128, %s3364_s16, %s2279_s17  }
 0xf32 PF: > { %p2804_p1 = scmp.ge.s32.totalorder %s2918_s12, 2  ;;  %s2304_s21 = sand.u32 1, %s2906_s30  }
 0xf33   : > { %s2305_s13 = scalar_lea.sflag [#allocation3], %s2304_s21 }
 0xf34   : > { %p2801_p2 = pnand %p2804_p1, %p3016_p6 }
 0xf36   : > { %2901 = dma.done.wait (!%p2801_p2), %s2305_s13, 128  }
 0xf37   : > { %2903 = vsyncadd (!%p2801_p2), %s2305_s13, 4294967168  ;;  %p19_p3 = scmp.ge.s32.totalorder %s2999_s15, 4   ;;  %s3419_s30 = smov %s2910_s10 }
 0xf38   : > { %s3420_s10 = smov %s2914_s11  ;;  %s3421_s11 = smov %s3010_s18 }
 0xf39   : > { %s3422_s12 = smov %s2999_s15  ;;  %21 = sbr.rel (!%p19_p3) target bundleno = 3 (0x3), region = 112 }
 0xf40   :  { %2310 = vsyncpa [#allocation3], 1 }
 0xf41   :  { %2312 = vsyncpa [#allocation3 + $0x1], 1 }

</bundles_post_ra>
